<compile_context>
chip_gen: v6e
topology: v6e:2x2x1
jax: 0.10.0
libtpu: 0.0.40
codegen_flags: <defaults>
</compile_context>

<pallas_src>
import functools

import jax
import jax.numpy as jnp
from jax.experimental import pallas as pl
from jax.experimental.pallas import tpu as pltpu

_LANE = 128
_TARGET_BLOCK_ROWS = 4096   # (4096, 128) f32 = 2 MiB per input tile (8 MiB double-buffered)


def _num_tensorcores():
    """2 TensorCores only on v7x; v5e/v6e are single-core (extra axis = pure overhead)."""
    try:
        kind = jax.devices()[0].device_kind.lower()
    except Exception:
        return 1
    return 2 if ("v7" in kind or "7x" in kind) else 1


def _bce_partial_kernel(x_ref, t_ref, out_ref, *, m_rows_total, block_rows):
    j = pl.program_id(1)

    @pl.when(j == 0)
    def _init():
        out_ref[...] = jnp.zeros_like(out_ref)

    # Global block index; blocks_per_core == pl.num_programs(1).
    blk = pl.program_id(0) * pl.num_programs(1) + j
    rows_left = m_rows_total - blk * block_rows  # >0 iff this block holds real rows

    sublane_groups = block_rows // 8 if (block_rows % 8 == 0) else 0

    def _accumulate(loss):
        if sublane_groups:
            # Pure VPU vreg adds; the cross-sublane/cross-lane reduce is deferred
            # to the (tiny) wrapper-side jnp.sum over (ncores, 8, 128).
            out_ref[...] += loss.reshape(sublane_groups, 8, _LANE).sum(axis=0)[None]
        else:
            # Single-block fallback when m_rows (< 8 or not 8-aligned) == block_rows.
            out_ref[0:1, 0:1, :] += jnp.sum(loss, axis=0, keepdims=True)[None]

    @pl.when(rows_left > 0)
    def _compute():
        x = x_ref[...].astype(jnp.float32)
        t = t_ref[...].astype(jnp.float32)
        # Matches the reference module exactly: no clamping (unlike nn.BCELoss).
        loss = -(t * jnp.log(x) + (1.0 - t) * jnp.log(1.0 - x))

        @pl.when(rows_left >= block_rows)
        def _interior():          # full block: no mask work at all
            _accumulate(loss)

        @pl.when(rows_left < block_rows)
        def _edge():              # partial last block: row mask (select, NaN-safe)
            rows = jax.lax.broadcasted_iota(jnp.int32, (block_rows, _LANE), 0)
            _accumulate(jnp.where(rows < rows_left, loss, 0.0))


def bce_loss(inputs, targets):
    assert inputs.shape == targets.shape
    n = inputs.size  # static element count

    x_flat = inputs.reshape(-1)
    t_flat = targets.reshape(-1)

    n_prefix = (n // _LANE) * _LANE     # 128-aligned prefix handled by the kernel
    m_rows = n_prefix // _LANE
    total = jnp.float32(0.0)

    if m_rows > 0:
        # Contiguous prefix slice + reshape: lowers to a bitcast, not an HBM copy.
        x2 = x_flat[:n_prefix].reshape(m_rows, _LANE)
        t2 = t_flat[:n_prefix].reshape(m_rows, _LANE)

        block_rows = min(m_rows, _TARGET_BLOCK_ROWS)
        num_blocks = pl.cdiv(m_rows, block_rows)
        ncores = _num_tensorcores()
        if num_blocks < 2:
            ncores = 1
        ncores = min(ncores, num_blocks)
        blocks_per_core = pl.cdiv(num_blocks, ncores)

        if ncores * blocks_per_core == num_blocks:
            in_map = lambda c, j: (c * blocks_per_core + j, 0)
        else:
            # Clamp over-covered virtual blocks so the auto-DMA stays in bounds;
            # the kernel skips all compute for them (rows_left <= 0).
            last = num_blocks - 1
            in_map = lambda c, j: (jnp.minimum(c * blocks_per_core + j, last), 0)

        kernel = functools.partial(
            _bce_partial_kernel, m_rows_total=m_rows, block_rows=block_rows)

        in_bytes = n_prefix * (x2.dtype.itemsize + t2.dtype.itemsize)
        cost = pl.CostEstimate(
            flops=6 * n_prefix,
            transcendentals=2 * n_prefix,
            bytes_accessed=in_bytes + ncores * 8 * _LANE * 4,
        )

        partials = pl.pallas_call(
            kernel,
            out_shape=jax.ShapeDtypeStruct((ncores, 8, _LANE), jnp.float32),
            grid_spec=pltpu.PrefetchScalarGridSpec(
                num_scalar_prefetch=0,
                grid=(ncores, blocks_per_core),
                in_specs=[
                    pl.BlockSpec((block_rows, _LANE), in_map),
                    pl.BlockSpec((block_rows, _LANE), in_map),
                ],
                out_specs=pl.BlockSpec((1, 8, _LANE), lambda c, j: (c, 0, 0)),
            ),
            compiler_params=pltpu.CompilerParams(
                dimension_semantics=("parallel", "arbitrary"),
            ),
            cost_estimate=cost,
        )(x2, t2)

        total = total + jnp.sum(partials)

    tail = n - n_prefix
    if tail:
        # <128 leftover elements: plain jnp, negligible cost, no padding copies.
        xt = x_flat[n_prefix:].astype(jnp.float32)
        tt = t_flat[n_prefix:].astype(jnp.float32)
        total = total + jnp.sum(-(tt * jnp.log(xt) + (1.0 - tt) * jnp.log(1.0 - xt)))

    return total / jnp.float32(n)


if __name__ == "__main__":
    key = jax.random.PRNGKey(0)
    k1, k2, k3, k4, k5, k6 = jax.random.split(key, 6)

    def reference(x, t):
        x = x.astype(jnp.float32)
        t = t.astype(jnp.float32)
        return jnp.mean(-(t * jnp.log(x) + (1.0 - t) * jnp.log(1.0 - x)))

    # Small NCHW case consistent with the module (single full block, fast path).
    shape = (2, 4, 16, 16)  # B, C, H, W
    inputs = jax.random.uniform(k1, shape, jnp.float32, minval=0.05, maxval=0.95)
    targets = jax.random.uniform(k2, shape, jnp.float32, minval=0.0, maxval=1.0)
    loss = bce_loss(inputs, targets)
    jax.block_until_ready(loss)
    ref = reference(inputs, targets)
    assert jnp.allclose(loss, ref, rtol=1e-5, atol=1e-6), (loss, ref)

    # Ragged case: multi-block grid, partial (masked) edge block, <128-element tail.
    shape2 = (2, 4, 300, 301)  # n = 722,400 -> 5643 rows of 128 + tail of 96
    inputs2 = jax.random.uniform(k3, shape2, jnp.float32, minval=0.05, maxval=0.95)
    targets2 = jax.random.uniform(k4, shape2, jnp.float32, minval=0.0, maxval=1.0)
    loss2 = bce_loss(inputs2, targets2)
    jax.block_until_ready(loss2)
    ref2 = reference(inputs2, targets2)
    assert jnp.allclose(loss2, ref2, rtol=1e-4, atol=1e-6), (loss2, ref2)

    # Tiny case (< 128 elements): pure wrapper-tail path, no Pallas call.
    shape3 = (3, 5)
    inputs3 = jax.random.uniform(k5, shape3, jnp.float32, minval=0.05, maxval=0.95)
    targets3 = jax.random.uniform(k6, shape3, jnp.float32, minval=0.0, maxval=1.0)
    loss3 = bce_loss(inputs3, targets3)
    jax.block_until_ready(loss3)
    ref3 = reference(inputs3, targets3)
    assert jnp.allclose(loss3, ref3, rtol=1e-5, atol=1e-6), (loss3, ref3)

    print("KERNEL_OK")
</pallas_src>

<mosaic_0001>
module attributes {stable_mosaic.version = 11 : i64} {
  func.func @_bce_partial_kernel(%arg0: i32, %arg1: i32, %arg2: memref<16x128xf32, #tpu.memory_space<vmem>>, %arg3: memref<16x128xf32, #tpu.memory_space<vmem>>, %arg4: memref<1x8x128xf32, #tpu.memory_space<vmem>>) attributes {dimension_semantics = [#tpu.dimension_semantics<parallel>, #tpu.dimension_semantics<arbitrary>], iteration_bounds = array<i64: 1, 1>, scalar_prefetch = 0 : i64, scratch_operands = 0 : i64, tpu.core_type = #tpu.core_type<tc>, window_params = [{transform_indices = @transform_0, window_bounds = array<i64: 16, 128>}, {transform_indices = @transform_1, window_bounds = array<i64: 16, 128>}, {transform_indices = @transform_2, window_bounds = array<i64: 1, 8, 128>}]} {
    %c0_i32 = arith.constant 0 : i32
    %0 = arith.cmpi eq, %arg1, %c0_i32 : i32
    %1 = arith.extui %0 : i1 to i32
    %c0_i32_0 = arith.constant 0 : i32
    %2 = arith.cmpi ne, %1, %c0_i32_0 : i32
    scf.if %2 {
      %cst = arith.constant 0.000000e+00 : f32
      %10 = vector.broadcast %cst : f32 to vector<1x8x128xf32>
      %c0 = arith.constant 0 : index
      %c0_4 = arith.constant 0 : index
      %c0_5 = arith.constant 0 : index
      %11 = vector.load %arg4[%c0, %c0_4, %c0_5] : memref<1x8x128xf32, #tpu.memory_space<vmem>>, vector<1x8x128xf32>
      tpu.vector_store %arg4[%c0, %c0_4, %c0_5], %10 {strides = array<i32>} : memref<1x8x128xf32, #tpu.memory_space<vmem>>, vector<1x8x128xf32>,
    } else {
    }
    %c1_i32 = arith.constant 1 : i32
    %3 = arith.muli %arg0, %c1_i32 : i32
    %4 = arith.addi %3, %arg1 : i32
    %c16_i32 = arith.constant 16 : i32
    %5 = arith.muli %4, %c16_i32 : i32
    %c16_i32_1 = arith.constant 16 : i32
    %6 = arith.subi %c16_i32_1, %5 : i32
    %c0_i32_2 = arith.constant 0 : i32
    %7 = arith.cmpi sgt, %6, %c0_i32_2 : i32
    %8 = arith.extui %7 : i1 to i32
    %c0_i32_3 = arith.constant 0 : i32
    %9 = arith.cmpi ne, %8, %c0_i32_3 : i32
    scf.if %9 {
      %c0 = arith.constant 0 : index
      %c0_4 = arith.constant 0 : index
      %10 = vector.load %arg2[%c0, %c0_4] : memref<16x128xf32, #tpu.memory_space<vmem>>, vector<16x128xf32>
      %c0_5 = arith.constant 0 : index
      %c0_6 = arith.constant 0 : index
      %11 = vector.load %arg3[%c0_5, %c0_6] : memref<16x128xf32, #tpu.memory_space<vmem>>, vector<16x128xf32>
      %12 = math.log %10 : vector<16x128xf32>
      %13 = arith.mulf %11, %12 : vector<16x128xf32>
      %cst = arith.constant 1.000000e+00 : f32
      %14 = vector.broadcast %cst : f32 to vector<16x128xf32>
      %15 = arith.subf %14, %11 : vector<16x128xf32>
      %cst_7 = arith.constant 1.000000e+00 : f32
      %16 = vector.broadcast %cst_7 : f32 to vector<16x128xf32>
      %17 = arith.subf %16, %10 : vector<16x128xf32>
      %18 = math.log %17 : vector<16x128xf32>
      %19 = arith.mulf %15, %18 : vector<16x128xf32>
      %20 = arith.addf %13, %19 : vector<16x128xf32>
      %cst_8 = arith.constant 0.000000e+00 : f32
      %21 = vector.broadcast %cst_8 : f32 to vector<16x128xf32>
      %22 = arith.subf %21, %20 : vector<16x128xf32>
      %c16_i32_9 = arith.constant 16 : i32
      %23 = arith.cmpi sge, %6, %c16_i32_9 : i32
      %24 = arith.extui %23 : i1 to i32
      %c0_i32_10 = arith.constant 0 : i32
      %25 = arith.cmpi ne, %24, %c0_i32_10 : i32
      scf.if %25 {
        %c0_13 = arith.constant 0 : index
        %c0_14 = arith.constant 0 : index
        %c0_15 = arith.constant 0 : index
        %29 = vector.load %arg4[%c0_13, %c0_14, %c0_15] : memref<1x8x128xf32, #tpu.memory_space<vmem>>, vector<1x8x128xf32>
        %30 = vector.shape_cast %22 : vector<16x128xf32> to vector<2x8x128xf32>
        %cst_16 = arith.constant dense<0.000000e+00> : vector<8x128xf32>
        %31 = vector.multi_reduction <add>, %30, %cst_16 [0] : vector<2x8x128xf32> to vector<8x128xf32>
        %32 = vector.shape_cast %31 : vector<8x128xf32> to vector<1x8x128xf32>
        %33 = arith.addf %29, %32 : vector<1x8x128xf32>
        %c0_17 = arith.constant 0 : index
        %c0_18 = arith.constant 0 : index
        %c0_19 = arith.constant 0 : index
        %34 = vector.load %arg4[%c0_17, %c0_18, %c0_19] : memref<1x8x128xf32, #tpu.memory_space<vmem>>, vector<1x8x128xf32>
        tpu.vector_store %arg4[%c0_17, %c0_18, %c0_19], %33 {strides = array<i32>} : memref<1x8x128xf32, #tpu.memory_space<vmem>>, vector<1x8x128xf32>,
      } else {
      }
      %c16_i32_11 = arith.constant 16 : i32
      %26 = arith.cmpi slt, %6, %c16_i32_11 : i32
      %27 = arith.extui %26 : i1 to i32
      %c0_i32_12 = arith.constant 0 : i32
      %28 = arith.cmpi ne, %27, %c0_i32_12 : i32
      scf.if %28 {
        %29 = tpu.iota {dimensions = array<i32: 0>} : vector<16x128xi32>
        %30 = vector.broadcast %6 : i32 to vector<16x128xi32>
        %31 = arith.cmpi slt, %29, %30 : vector<16x128xi32>
        %cst_13 = arith.constant 0.000000e+00 : f32
        %32 = vector.broadcast %cst_13 : f32 to vector<16x128xf32>
        %33 = arith.select %31, %22, %32 : vector<16x128xi1>, vector<16x128xf32>
        %c0_14 = arith.constant 0 : index
        %c0_15 = arith.constant 0 : index
        %c0_16 = arith.constant 0 : index
        %34 = vector.load %arg4[%c0_14, %c0_15, %c0_16] : memref<1x8x128xf32, #tpu.memory_space<vmem>>, vector<1x8x128xf32>
        %35 = vector.shape_cast %33 : vector<16x128xf32> to vector<2x8x128xf32>
        %cst_17 = arith.constant dense<0.000000e+00> : vector<8x128xf32>
        %36 = vector.multi_reduction <add>, %35, %cst_17 [0] : vector<2x8x128xf32> to vector<8x128xf32>
        %37 = vector.shape_cast %36 : vector<8x128xf32> to vector<1x8x128xf32>
        %38 = arith.addf %34, %37 : vector<1x8x128xf32>
        %c0_18 = arith.constant 0 : index
        %c0_19 = arith.constant 0 : index
        %c0_20 = arith.constant 0 : index
        %39 = vector.load %arg4[%c0_18, %c0_19, %c0_20] : memref<1x8x128xf32, #tpu.memory_space<vmem>>, vector<1x8x128xf32>
        tpu.vector_store %arg4[%c0_18, %c0_19, %c0_20], %38 {strides = array<i32>} : memref<1x8x128xf32, #tpu.memory_space<vmem>>, vector<1x8x128xf32>,
      } else {
      }
    } else {
    }
    return
  }
  func.func @transform_0(%arg0: i32, %arg1: i32) -> (i32, i32) {
    %c1_i32 = arith.constant 1 : i32
    %0 = arith.muli %arg0, %c1_i32 : i32
    %1 = arith.addi %0, %arg1 : i32
    %c0_i32 = arith.constant 0 : i32
    %c0_i32_0 = arith.constant 0 : i32
    return %1, %c0_i32 : i32, i32
  }
  func.func @transform_1(%arg0: i32, %arg1: i32) -> (i32, i32) {
    %c1_i32 = arith.constant 1 : i32
    %0 = arith.muli %arg0, %c1_i32 : i32
    %1 = arith.addi %0, %arg1 : i32
    %c0_i32 = arith.constant 0 : i32
    %c0_i32_0 = arith.constant 0 : i32
    return %1, %c0_i32 : i32, i32
  }
  func.func @transform_2(%arg0: i32, %arg1: i32) -> (i32, i32, i32) {
    %c0_i32 = arith.constant 0 : i32
    %c0_i32_0 = arith.constant 0 : i32
    %c0_i32_1 = arith.constant 0 : i32
    return %arg0, %c0_i32, %c0_i32_0 : i32, i32, i32
  }
}

</mosaic_0001>

<bundles_post_ra>
// kernel: tpu_custom_call.1
= control target key start
LH: loop header
LB: loop body
LE: loop exit
PB: predicated region body
PF: predicated region fallthrough
CT: control target
= control target key end

     0   :  { %7 = vsyncpa [#allocation3], 0  ;;  %s237_s0 = inlined_call_operand.hbm [shape: f32[16,128], index: 0, kind: input, shape index: {}]   ;;  %s238_s1 = inlined_call_operand.hbm [shape: f32[16,128], index: 1, kind: input, shape index: {}]   ;;  %s239_s2 = inlined_call_operand.hbm [shape: f32[1,8,128], index: 2, kind: output, shape index: {}]  }
   0x1   :  { %8 = vsyncpa [#allocation6], 0 }
   0x2   :  { %9 = vsyncpa [#allocation4], 0  ;;  %s208_s9 = smov [#allocation2]  }
   0x3   :  { %s19_s10 = sshll.u32 %s208_s9, 4  ;;  %s20_s10 = int_to_ptr.vmem [resolvable:$true] %s19_s10 }
   0x4   :  { %s150_s11 = scalar_lea.vmem %s20_s10, 256  ;;  %p155_p1 = scmp.lt.s32.totalorder %s20_s10, %s20_s10 }
   0x5   :  { %p151_p0 = scmp.ne.s32.totalorder %s20_s10, %s150_s11  ;;  %p156_p2 = scmp.lt.s32.totalorder %s150_s11, %s150_s11 }
   0x7   :  { %p157_p3 = por %p156_p2, %p155_p1 }
   0x9   :  { %p158_p4 = pnand %p157_p3, %p151_p0 }
   0xb   :  { %161 = shalt.err (!%p158_p4)
}
   0xc   :  { %s209_s12 = smov 128   ;;  %s210_s13 = smov 8  }
   0xd   :  { %25 = dma.hbm_to_vmem [thread:$0]  %s237_s0, 256, %s20_s10, [#allocation3], %s209_s12, %s209_s12, %s210_s13  }
   0xe   :  { %s211_s16 = smov [#allocation5]  }
   0xf   :  { %s35_s17 = sshll.u32 %s211_s16, 4  ;;  %s36_s17 = int_to_ptr.vmem [resolvable:$true] %s35_s17 }
  0x10   :  { %s170_s18 = scalar_lea.vmem %s36_s17, 256  ;;  %p175_p6 = scmp.lt.s32.totalorder %s36_s17, %s36_s17 }
  0x11   :  { %p171_p5 = scmp.ne.s32.totalorder %s36_s17, %s170_s18  ;;  %p176_p7 = scmp.lt.s32.totalorder %s170_s18, %s170_s18 }
  0x13   :  { %p177_p8 = por %p176_p7, %p175_p6 }
  0x15   :  { %p178_p9 = pnand %p177_p8, %p171_p5 }
  0x17   :  { %181 = shalt.err (!%p178_p9)
}
  0x18   :  { %41 = dma.hbm_to_vmem [thread:$0]  %s238_s1, 256, %s36_s17, [#allocation6], %s209_s12, %s209_s12, %s210_s13  }
  0x19   :  { %202 = dma.done.wait [#allocation3], 256  }
  0x1a   :  { %203 = vsyncadd [#allocation3], 4294967040 }
  0x1b   :  { %204 = dma.done.wait [#allocation6], 256  }
  0x1c   :  { %205 = vsyncadd [#allocation6], 4294967040  ;;  %v64_v0 = vld [vmem:[#allocation2] sm:$0xff]  ;;  %v65_v1 = vld [vmem:[#allocation2 + $0x8] sm:$0xff]  ;;  %s212_s0 = smov [#allocation7]  }
  0x1d   :  { %134 = vlog2.f32 %v64_v0  ;;  %v76_v2 = vsub.f32 1.0, %v64_v0  ;;  %v77_v3 = vsub.f32 1.0, %v65_v1  ;;  %v66_v4 = vld [vmem:[#allocation5] sm:$0xff]  ;;  %v67_v5 = vld [vmem:[#allocation5 + $0x8] sm:$0xff]  ;;  %s118_s1 = sshll.u32 %s212_s0, 4  ;;  %s119_s1 = int_to_ptr.vmem [resolvable:$true] %s118_s1 }
  0x1e   :  { %136 = vlog2.f32 %v65_v1  ;;  %v74_v9 = vsub.f32 1.0, %v66_v4  ;;  %v75_v12 = vsub.f32 1.0, %v67_v5  ;;  %s182_s21 = scalar_lea.vmem %s119_s1, 128  ;;  %p187_p11 = scmp.lt.s32.totalorder %s119_s1, %s119_s1 }
  0x1f   :  { %138 = vlog2.f32 %v76_v2  ;;  %p183_p10 = scmp.ne.s32.totalorder %s119_s1, %s182_s21  ;;  %p188_p12 = scmp.lt.s32.totalorder %s182_s21, %s182_s21 }
  0x20   :  { %140 = vlog2.f32 %v77_v3 }
  0x21   :  { %p189_p13 = por %p188_p12, %p187_p11 }
  0x23   :  { %p190_p0 = pnand %p189_p13, %p183_p10 }
  0x2a   :  { %v135_v6 = vpop.eup %134 }
  0x2b   :  { %v137_v7 = vpop.eup %136  ;;  %v69_v8 = vmul.f32 0.6931472, %v135_v6 }
  0x2c   :  { %v139_v10 = vpop.eup %138  ;;  %v71_v11 = vmul.f32 0.6931472, %v137_v7 }
  0x2d   :  { %v141_v13 = vpop.eup %140  ;;  %v72_v14 = vmul.f32 %v69_v8, %v66_v4  ;;  %v79_v15 = vmul.f32 0.6931472, %v139_v10 }
  0x2e   :  { %v73_v16 = vmul.f32 %v71_v11, %v67_v5  ;;  %v81_v17 = vmul.f32 0.6931472, %v141_v13 }
  0x2f   :  { %v82_v18 = vmul.f32 %v79_v15, %v74_v9 }
  0x30   :  { %v83_v19 = vmul.f32 %v81_v17, %v75_v12 }
  0x31   :  { %v84_v20 = vadd.f32 %v82_v18, %v72_v14 }
  0x32   :  { %v85_v21 = vadd.f32 %v83_v19, %v73_v16 }
  0x33   :  { %v86_v22 = vsub.f32 0.0, %v84_v20 }
  0x34   :  { %v87_v23 = vsub.f32 0.0, %v85_v21 }
  0x36   :  { %v93_v24 = vadd.f32 %v87_v23, %v86_v22 }
  0x38   :  { %95 = vst [vmem:[#allocation7] sm:$0xff] %v93_v24 }
  0x39   :  { %193 = shalt.err (!%p190_p0)
}
  0x3a   :  { %121 = dma.vmem_to_hbm [thread:$0]  %s119_s1, 128, %s239_s2, [#allocation4]  }
  0x3b   :  { %206 = dma.done.wait [#allocation4], 128  }
  0x3c   :  { %207 = vsyncadd [#allocation4], 4294967168 }
  0x3d   :  { %125 = vsyncpa [#allocation3], 1 }
  0x3e   :  { %126 = vsyncpa [#allocation6], 1 }
  0x3f   :  { %127 = vsyncpa [#allocation4], 1 }

</bundles_post_ra>
